<compile_context>
chip_gen: v6e
topology: v6e:2x2x1
jax: 0.10.0
libtpu: 0.0.40
codegen_flags: <defaults>
</compile_context>

<pallas_src>
import functools

import jax
import jax.numpy as jnp
from jax import lax
from jax.experimental import pallas as pl
from jax.experimental.pallas import tpu as pltpu


def _round_up(x, m):
    return (x + m - 1) // m * m


def _cdiv(a, b):
    return (a + b - 1) // b


def _lmhead_ce_kernel(h_ref, w_ref, lbl_ref, *refs,
                      scale, pad_id, n_rows, vocab_size,
                      ragged_rows, ragged_v, compute_logits):
    """Vocab-tile j (outer) x row-tile i (inner): scaled lm_head matmul + online CE.

    h_ref   : (TM, D)   decoder hidden-state tile (native dtype, streamed per step)
    w_ref   : (TN, D)   lm_head weight tile (un-transposed, resident across row tiles)
    lbl_ref : (TM, 1)   int32 labels tile
    outputs : [logits (TM, TN) if compute_logits,] stats (1, 2, 128)
    scratch : m/l/g state of shape (n_row_tiles, TM, 1) f32 (all row tiles' state)
    """
    if compute_logits:
        logits_ref, stats_ref, m_sc, l_sc, g_sc = refs
    else:
        stats_ref, m_sc, l_sc, g_sc = refs

    j = pl.program_id(0)            # vocab tile (outer, reduction axis)
    i = pl.program_id(1)            # row tile (inner)
    nj = pl.num_programs(0)
    tm = h_ref.shape[0]
    tn = w_ref.shape[0]

    @pl.when(j == 0)
    def _init():
        m_sc[i] = jnp.full((tm, 1), -jnp.inf, dtype=jnp.float32)
        l_sc[i] = jnp.zeros((tm, 1), dtype=jnp.float32)
        g_sc[i] = jnp.zeros((tm, 1), dtype=jnp.float32)

    h = h_ref[...]
    if scale != 1.0:                 # tie_word_embeddings: h * model_dim**-0.5
        h = h * jnp.array(scale, dtype=h.dtype)

    # (TM, D) x (TN, D) contracted on dim 1 of both -> (TM, TN); f32 MXU accumulation
    # from native-dtype operands (no upcast before the matmul).
    logits = lax.dot_general(h, w_ref[...],
                             dimension_numbers=(((1,), (1,)), ((), ())),
                             preferred_element_type=jnp.float32)
    if compute_logits:
        logits_ref[...] = logits.astype(logits_ref.dtype)

    lbl = lbl_ref[...]                                          # (TM, 1) int32
    local_col = lax.broadcasted_iota(jnp.int32, (tm, tn), 1)    # per-tile column index

    # Columns beyond V exist only in the (ragged) last vocab tile; exclude them from
    # the softmax statistics.  Only emitted when V % tn != 0.
    if ragged_v:
        logits_stat = jnp.where(local_col < (vocab_size - j * tn), logits, -jnp.inf)
    else:
        logits_stat = logits

    m_prev = m_sc[i]
    m_new = jnp.maximum(m_prev, jnp.max(logits_stat, axis=-1, keepdims=True))
    alpha = jnp.exp(m_prev - m_new)
    l_sc[i] = alpha * l_sc[i] + jnp.sum(jnp.exp(logits_stat - m_new),
                                        axis=-1, keepdims=True)
    # The label column falls in exactly one vocab tile; accumulate its logit.
    g_sc[i] = g_sc[i] + jnp.sum(jnp.where(local_col == (lbl - j * tn), logits, 0.0),
                                axis=-1, keepdims=True)
    m_sc[i] = m_new

    @pl.when(j == nj - 1)
    def _finalize():
        lse = m_sc[i] + jnp.log(l_sc[i])
        nll = lse - g_sc[i]                                     # (TM, 1)
        valid = (lbl != pad_id) & (lbl != -100)                 # pad positions ignored
        if ragged_rows:                                         # rows >= N are garbage
            row = i * tm + lax.broadcasted_iota(jnp.int32, (tm, 1), 0)
            valid = valid & (row < n_rows)
        loss_sum = jnp.sum(jnp.where(valid, nll, 0.0))
        cnt_sum = jnp.sum(valid.astype(jnp.float32))
        lane = lax.broadcasted_iota(jnp.int32, stats_ref.shape, 1)   # (1, 2, 128)
        stats_ref[...] = jnp.where(lane == 0, loss_sum, cnt_sum)


def t5_lm_head_and_loss(sequence_output, lm_head_weight, labels, *,
                        pad_token_id=0, tie_word_embeddings=True,
                        compute_logits=True, logits_dtype=None,
                        tm=512, tn=2048,
                        dimension_semantics=("arbitrary", "arbitrary")):
    """lm_logits + masked-mean cross-entropy loss (T5Sampling, do_sample=False).

    sequence_output : (B, S, D)  output of self.model.decoder
    lm_head_weight  : (V, D)     nn.Linear(D, V, bias=False).weight, un-transposed
    labels          : (B, S) int
    Returns (lm_logits (B, S, V) or None if compute_logits=False, scalar loss).

    Perf knobs: pass bf16 sequence_output / weight (and/or logits_dtype=jnp.bfloat16)
    to halve HBM streams (MXU still accumulates in f32); compute_logits=False skips
    the N*V logits writeback for loss-only callers.
    NOTE: the softmax state scratch is ~1.5 KiB * N of VMEM; fine for typical
    (batch*seq) sizes, re-tile for extremely large N.
    """
    B, S, D = sequence_output.shape
    V, D_w = lm_head_weight.shape
    assert D_w == D, "lm_head weight must be (V, D)"
    N = B * S

    logits_dtype = (sequence_output.dtype if logits_dtype is None
                    else jnp.dtype(logits_dtype))

    tm = min(tm, _round_up(N, 8))          # row (sublane) tile
    tn = min(tn, _round_up(V, 128))        # vocab (lane) tile
    n_row_tiles = _cdiv(N, tm)
    n_vocab_tiles = _cdiv(V, tn)

    h = sequence_output.reshape(N, D)
    lbl = labels.reshape(N, 1).astype(jnp.int32)
    w = lm_head_weight                     # (V, D) as-is — no transpose, no padding

    scale = float(D) ** (-0.5) if tie_word_embeddings else 1.0

    kernel = functools.partial(
        _lmhead_ce_kernel, scale=scale, pad_id=pad_token_id,
        n_rows=N, vocab_size=V,
        ragged_rows=(N % tm != 0), ragged_v=(V % tn != 0),
        compute_logits=compute_logits)

    # --- VMEM budget: double-buffered tiles + per-row-tile online-softmax state ---
    b_h = jnp.dtype(h.dtype).itemsize
    b_w = jnp.dtype(w.dtype).itemsize
    lane_row_bytes = tm * 512                    # a (tm, 1) f32 tile, lane-padded to 128
    vmem_bytes = (2 * tn * D * b_w               # weight tile (changes once per outer j)
                  + 2 * tm * D * b_h             # hidden tile (streamed per step)
                  + 2 * lane_row_bytes           # labels tile
                  + 2 * 2 * 128 * 4              # stats output block
                  + 3 * n_row_tiles * lane_row_bytes)   # m / l / g state for all rows
    if compute_logits:
        vmem_bytes += 2 * tm * tn * jnp.dtype(logits_dtype).itemsize

    # Clamp against the physical VMEM of the current chip (v7x: 64 MiB per TC).
    phys_vmem = 64 << 20
    try:
        phys_vmem = int(getattr(pltpu.get_tpu_info(), "vmem_capacity_bytes", phys_vmem))
    except Exception:
        pass
    vmem_limit = int(min(max(vmem_bytes + (6 << 20), 32 << 20), (phys_vmem * 3) // 4))
    vmem_limit = max(vmem_limit, vmem_bytes + (2 << 20))

    in_specs = [
        pl.BlockSpec((tm, D), lambda j, i: (i, 0)),    # hidden: streamed per row tile
        pl.BlockSpec((tn, D), lambda j, i: (j, 0)),    # weight: changes only per vocab tile
        pl.BlockSpec((tm, 1), lambda j, i: (i, 0)),    # labels
    ]
    stats_spec = pl.BlockSpec((1, 2, 128), lambda j, i: (i, 0, 0))
    stats_shape = jax.ShapeDtypeStruct((n_row_tiles, 2, 128), jnp.float32)

    if compute_logits:
        out_shape = (jax.ShapeDtypeStruct((N, V), logits_dtype), stats_shape)
        out_specs = [pl.BlockSpec((tm, tn), lambda j, i: (i, j)), stats_spec]
    else:
        out_shape = stats_shape
        out_specs = stats_spec

    outs = pl.pallas_call(
        kernel,
        out_shape=out_shape,
        grid_spec=pltpu.PrefetchScalarGridSpec(
            num_scalar_prefetch=0,
            grid=(n_vocab_tiles, n_row_tiles),   # vocab OUTER -> weight streamed once
            in_specs=in_specs,
            out_specs=out_specs,
            scratch_shapes=[pltpu.VMEM((n_row_tiles, tm, 1), jnp.float32)] * 3,
        ),
        compiler_params=pltpu.CompilerParams(
            dimension_semantics=dimension_semantics,
            vmem_limit_bytes=vmem_limit),
    )(h, w, lbl)

    if compute_logits:
        logits_flat, stats = outs
        lm_logits = logits_flat.reshape(B, S, V)
    else:
        stats = outs
        lm_logits = None

    loss_sum = jnp.sum(stats[:, 0, 0])
    cnt = jnp.sum(stats[:, 1, 0])
    # NOTE: if every label is pad/-100, cnt == 0 and the loss is NaN — this matches
    # PyTorch CrossEntropyLoss when all targets equal ignore_index.
    loss = loss_sum / cnt
    return lm_logits, loss


def _reference(sequence_output, lm_head_weight, labels, pad_id, tie):
    """Pure-JAX reference matching the PyTorch semantics (computed in f32)."""
    seq = sequence_output.astype(jnp.float32)
    w = lm_head_weight.astype(jnp.float32)
    D = seq.shape[-1]
    scale = D ** (-0.5) if tie else 1.0
    logits = (seq * scale) @ w.T
    lab = jnp.where(labels == pad_id, -100, labels)
    logp = jax.nn.log_softmax(logits, axis=-1)
    valid = lab != -100
    gathered = jnp.take_along_axis(
        logp, jnp.where(valid, lab, 0)[..., None], axis=-1)[..., 0]
    loss = -(jnp.sum(jnp.where(valid, gathered, 0.0))
             / jnp.sum(valid.astype(jnp.float32)))
    return logits, loss


if __name__ == "__main__":
    key = jax.random.PRNGKey(0)
    PAD = 0   # T5 pad_token_id

    # ---- case 1: small f32, single vocab tile, default tiles ----
    B, S, D, V = 2, 8, 32, 256
    k1, k2, k3, k4 = jax.random.split(key, 4)
    seq_out = jax.random.normal(k1, (B, S, D), dtype=jnp.float32)
    w = 0.05 * jax.random.normal(k2, (V, D), dtype=jnp.float32)
    labels = jax.random.randint(k3, (B, S), 0, V, dtype=jnp.int32)
    labels = labels.at[:, -2:].set(PAD)   # some padded label positions

    fn = jax.jit(functools.partial(t5_lm_head_and_loss, pad_token_id=PAD,
                                   tie_word_embeddings=True))
    lm_logits, loss = fn(seq_out, w, labels)
    jax.block_until_ready((lm_logits, loss))
    ref_logits, ref_loss = _reference(seq_out, w, labels, PAD, True)
    assert jnp.allclose(lm_logits, ref_logits, atol=1e-4, rtol=1e-4)
    assert jnp.allclose(loss, ref_loss, atol=1e-3, rtol=1e-4)

    # ---- case 2: ragged rows + ragged vocab, multi-tile online softmax ----
    B2, S2, D2, V2 = 2, 5, 32, 200   # N=10 (ragged vs tm=8), V=200 (ragged vs tn=128)
    k5, k6, k7 = jax.random.split(k4, 3)
    seq_out2 = jax.random.normal(k5, (B2, S2, D2), dtype=jnp.float32)
    w2 = 0.05 * jax.random.normal(k6, (V2, D2), dtype=jnp.float32)
    labels2 = jax.random.randint(k7, (B2, S2), 0, V2, dtype=jnp.int32)
    labels2 = labels2.at[:, -1:].set(PAD)

    fn2 = jax.jit(functools.partial(t5_lm_head_and_loss, pad_token_id=PAD,
                                    tie_word_embeddings=True, tm=8, tn=128))
    lm_logits2, loss2 = fn2(seq_out2, w2, labels2)
    jax.block_until_ready((lm_logits2, loss2))
    ref_logits2, ref_loss2 = _reference(seq_out2, w2, labels2, PAD, True)
    assert jnp.allclose(lm_logits2, ref_logits2, atol=1e-4, rtol=1e-4)
    assert jnp.allclose(loss2, ref_loss2, atol=1e-3, rtol=1e-4)

    # ---- case 3: bf16 operands, loss-only mode (no logits writeback) ----
    fn3 = jax.jit(functools.partial(t5_lm_head_and_loss, pad_token_id=PAD,
                                    tie_word_embeddings=True, compute_logits=False))
    no_logits, loss3 = fn3(seq_out.astype(jnp.bfloat16), w.astype(jnp.bfloat16), labels)
    jax.block_until_ready(loss3)
    assert no_logits is None
    assert jnp.allclose(loss3, ref_loss, atol=5e-2, rtol=5e-2)

    print("KERNEL_OK")
</pallas_src>

<mosaic_0001>
module attributes {stable_mosaic.version = 11 : i64} {
  func.func @_lmhead_ce_kernel(%arg0: i32, %arg1: i32, %arg2: memref<16x32xf32, #tpu.memory_space<vmem>>, %arg3: memref<256x32xf32, #tpu.memory_space<vmem>>, %arg4: memref<16x1xi32, #tpu.memory_space<vmem>>, %arg5: memref<16x256xf32, #tpu.memory_space<vmem>>, %arg6: memref<1x2x128xf32, #tpu.memory_space<vmem>>, %arg7: memref<1x16x1xf32, #tpu.memory_space<vmem>>, %arg8: memref<1x16x1xf32, #tpu.memory_space<vmem>>, %arg9: memref<1x16x1xf32, #tpu.memory_space<vmem>>) attributes {dimension_semantics = [#tpu.dimension_semantics<arbitrary>, #tpu.dimension_semantics<arbitrary>], iteration_bounds = array<i64: 1, 1>, scalar_prefetch = 0 : i64, scratch_operands = 3 : i64, tpu.core_type = #tpu.core_type<tc>, window_params = [{transform_indices = @transform_0, window_bounds = array<i64: 16, 32>}, {transform_indices = @transform_1, window_bounds = array<i64: 256, 32>}, {transform_indices = @transform_2, window_bounds = array<i64: 16, 1>}, {transform_indices = @transform_3, window_bounds = array<i64: 16, 256>}, {transform_indices = @transform_4, window_bounds = array<i64: 1, 2, 128>}]} {
    %c0_i32 = arith.constant 0 : i32
    %0 = arith.cmpi eq, %arg0, %c0_i32 : i32
    %1 = arith.extui %0 : i1 to i32
    %c0_i32_0 = arith.constant 0 : i32
    %2 = arith.cmpi ne, %1, %c0_i32_0 : i32
    scf.if %2 {
      %cst_27 = arith.constant 0xFF800000 : f32
      %57 = vector.broadcast %cst_27 : f32 to vector<16x1xf32>
      %58 = arith.index_cast %arg1 : i32 to index
      %c0_28 = arith.constant 0 : index
      %c0_29 = arith.constant 0 : index
      %59 = vector.load %arg7[%58, %c0_28, %c0_29] : memref<1x16x1xf32, #tpu.memory_space<vmem>>, vector<1x16x1xf32>
      %60 = vector.shape_cast %59 : vector<1x16x1xf32> to vector<16x1xf32>
      %61 = vector.shape_cast %57 : vector<16x1xf32> to vector<1x16x1xf32>
      tpu.vector_store %arg7[%58, %c0_28, %c0_29], %61 {strides = array<i32>} : memref<1x16x1xf32, #tpu.memory_space<vmem>>, vector<1x16x1xf32>,
      %cst_30 = arith.constant 0.000000e+00 : f32
      %62 = vector.broadcast %cst_30 : f32 to vector<16x1xf32>
      %63 = arith.index_cast %arg1 : i32 to index
      %c0_31 = arith.constant 0 : index
      %c0_32 = arith.constant 0 : index
      %64 = vector.load %arg8[%63, %c0_31, %c0_32] : memref<1x16x1xf32, #tpu.memory_space<vmem>>, vector<1x16x1xf32>
      %65 = vector.shape_cast %64 : vector<1x16x1xf32> to vector<16x1xf32>
      %66 = vector.shape_cast %62 : vector<16x1xf32> to vector<1x16x1xf32>
      tpu.vector_store %arg8[%63, %c0_31, %c0_32], %66 {strides = array<i32>} : memref<1x16x1xf32, #tpu.memory_space<vmem>>, vector<1x16x1xf32>,
      %cst_33 = arith.constant 0.000000e+00 : f32
      %67 = vector.broadcast %cst_33 : f32 to vector<16x1xf32>
      %68 = arith.index_cast %arg1 : i32 to index
      %c0_34 = arith.constant 0 : index
      %c0_35 = arith.constant 0 : index
      %69 = vector.load %arg9[%68, %c0_34, %c0_35] : memref<1x16x1xf32, #tpu.memory_space<vmem>>, vector<1x16x1xf32>
      %70 = vector.shape_cast %69 : vector<1x16x1xf32> to vector<16x1xf32>
      %71 = vector.shape_cast %67 : vector<16x1xf32> to vector<1x16x1xf32>
      tpu.vector_store %arg9[%68, %c0_34, %c0_35], %71 {strides = array<i32>} : memref<1x16x1xf32, #tpu.memory_space<vmem>>, vector<1x16x1xf32>,
    } else {
    }
    %c0 = arith.constant 0 : index
    %c0_1 = arith.constant 0 : index
    %3 = vector.load %arg2[%c0, %c0_1] : memref<16x32xf32, #tpu.memory_space<vmem>>, vector<16x32xf32>
    %cst = arith.constant 0.176776692 : f32
    %4 = vector.broadcast %cst : f32 to vector<16x32xf32>
    %5 = arith.mulf %3, %4 : vector<16x32xf32>
    %c0_2 = arith.constant 0 : index
    %c0_3 = arith.constant 0 : index
    %6 = vector.load %arg3[%c0_2, %c0_3] : memref<256x32xf32, #tpu.memory_space<vmem>>, vector<256x32xf32>
    %cst_4 = arith.constant dense<0.000000e+00> : vector<16x256xf32>
    %7 = tpu.matmul %5, %6, %cst_4 {dimension_numbers = #tpu.dot_dimension_numbers<[1], [1], [0], [0], [0, 0, 1, 0], [], []>} : vector<16x32xf32>, vector<256x32xf32>, vector<16x256xf32> -> vector<16x256xf32>
    %c0_5 = arith.constant 0 : index
    %c0_6 = arith.constant 0 : index
    %8 = vector.load %arg5[%c0_5, %c0_6] : memref<16x256xf32, #tpu.memory_space<vmem>>, vector<16x256xf32>
    tpu.vector_store %arg5[%c0_5, %c0_6], %7 {strides = array<i32>} : memref<16x256xf32, #tpu.memory_space<vmem>>, vector<16x256xf32>,
    %c0_7 = arith.constant 0 : index
    %c0_8 = arith.constant 0 : index
    %9 = vector.load %arg4[%c0_7, %c0_8] : memref<16x1xi32, #tpu.memory_space<vmem>>, vector<16x1xi32>
    %10 = tpu.iota {dimensions = array<i32: 1>} : vector<16x256xi32>
    %11 = arith.index_cast %arg1 : i32 to index
    %c0_9 = arith.constant 0 : index
    %c0_10 = arith.constant 0 : index
    %12 = vector.load %arg7[%11, %c0_9, %c0_10] : memref<1x16x1xf32, #tpu.memory_space<vmem>>, vector<1x16x1xf32>
    %13 = vector.shape_cast %12 : vector<1x16x1xf32> to vector<16x1xf32>
    %cst_11 = arith.constant dense<0xFF800000> : vector<16xf32>
    %14 = vector.multi_reduction <maximumf>, %7, %cst_11 [1] : vector<16x256xf32> to vector<16xf32>
    %15 = vector.shape_cast %14 : vector<16xf32> to vector<16x1xf32>
    %16 = arith.maximumf %13, %15 : vector<16x1xf32>
    %17 = arith.subf %13, %16 : vector<16x1xf32>
    %18 = math.exp %17 : vector<16x1xf32>
    %19 = arith.index_cast %arg1 : i32 to index
    %c0_12 = arith.constant 0 : index
    %c0_13 = arith.constant 0 : index
    %20 = vector.load %arg8[%19, %c0_12, %c0_13] : memref<1x16x1xf32, #tpu.memory_space<vmem>>, vector<1x16x1xf32>
    %21 = vector.shape_cast %20 : vector<1x16x1xf32> to vector<16x1xf32>
    %22 = arith.mulf %18, %21 : vector<16x1xf32>
    %23 = vector.broadcast %16 : vector<16x1xf32> to vector<16x256xf32>
    %24 = arith.subf %7, %23 : vector<16x256xf32>
    %25 = math.exp %24 : vector<16x256xf32>
    %cst_14 = arith.constant dense<0.000000e+00> : vector<16xf32>
    %26 = vector.multi_reduction <add>, %25, %cst_14 [1] : vector<16x256xf32> to vector<16xf32>
    %27 = vector.shape_cast %26 : vector<16xf32> to vector<16x1xf32>
    %28 = arith.addf %22, %27 : vector<16x1xf32>
    %29 = arith.index_cast %arg1 : i32 to index
    %c0_15 = arith.constant 0 : index
    %c0_16 = arith.constant 0 : index
    %30 = vector.load %arg8[%29, %c0_15, %c0_16] : memref<1x16x1xf32, #tpu.memory_space<vmem>>, vector<1x16x1xf32>
    %31 = vector.shape_cast %30 : vector<1x16x1xf32> to vector<16x1xf32>
    %32 = vector.shape_cast %28 : vector<16x1xf32> to vector<1x16x1xf32>
    tpu.vector_store %arg8[%29, %c0_15, %c0_16], %32 {strides = array<i32>} : memref<1x16x1xf32, #tpu.memory_space<vmem>>, vector<1x16x1xf32>,
    %33 = arith.index_cast %arg1 : i32 to index
    %c0_17 = arith.constant 0 : index
    %c0_18 = arith.constant 0 : index
    %34 = vector.load %arg9[%33, %c0_17, %c0_18] : memref<1x16x1xf32, #tpu.memory_space<vmem>>, vector<1x16x1xf32>
    %35 = vector.shape_cast %34 : vector<1x16x1xf32> to vector<16x1xf32>
    %c256_i32 = arith.constant 256 : i32
    %36 = arith.muli %arg0, %c256_i32 : i32
    %37 = vector.broadcast %36 : i32 to vector<16x1xi32>
    %38 = arith.subi %9, %37 : vector<16x1xi32>
    %39 = vector.broadcast %38 : vector<16x1xi32> to vector<16x256xi32>
    %40 = arith.cmpi eq, %10, %39 : vector<16x256xi32>
    %cst_19 = arith.constant 0.000000e+00 : f32
    %41 = vector.broadcast %cst_19 : f32 to vector<16x256xf32>
    %42 = arith.select %40, %7, %41 : vector<16x256xi1>, vector<16x256xf32>
    %cst_20 = arith.constant dense<0.000000e+00> : vector<16xf32>
    %43 = vector.multi_reduction <add>, %42, %cst_20 [1] : vector<16x256xf32> to vector<16xf32>
    %44 = vector.shape_cast %43 : vector<16xf32> to vector<16x1xf32>
    %45 = arith.addf %35, %44 : vector<16x1xf32>
    %46 = arith.index_cast %arg1 : i32 to index
    %c0_21 = arith.constant 0 : index
    %c0_22 = arith.constant 0 : index
    %47 = vector.load %arg9[%46, %c0_21, %c0_22] : memref<1x16x1xf32, #tpu.memory_space<vmem>>, vector<1x16x1xf32>
    %48 = vector.shape_cast %47 : vector<1x16x1xf32> to vector<16x1xf32>
    %49 = vector.shape_cast %45 : vector<16x1xf32> to vector<1x16x1xf32>
    tpu.vector_store %arg9[%46, %c0_21, %c0_22], %49 {strides = array<i32>} : memref<1x16x1xf32, #tpu.memory_space<vmem>>, vector<1x16x1xf32>,
    %50 = arith.index_cast %arg1 : i32 to index
    %c0_23 = arith.constant 0 : index
    %c0_24 = arith.constant 0 : index
    %51 = vector.load %arg7[%50, %c0_23, %c0_24] : memref<1x16x1xf32, #tpu.memory_space<vmem>>, vector<1x16x1xf32>
    %52 = vector.shape_cast %51 : vector<1x16x1xf32> to vector<16x1xf32>
    %53 = vector.shape_cast %16 : vector<16x1xf32> to vector<1x16x1xf32>
    tpu.vector_store %arg7[%50, %c0_23, %c0_24], %53 {strides = array<i32>} : memref<1x16x1xf32, #tpu.memory_space<vmem>>, vector<1x16x1xf32>,
    %c0_i32_25 = arith.constant 0 : i32
    %54 = arith.cmpi eq, %arg0, %c0_i32_25 : i32
    %55 = arith.extui %54 : i1 to i32
    %c0_i32_26 = arith.constant 0 : i32
    %56 = arith.cmpi ne, %55, %c0_i32_26 : i32
    scf.if %56 {
      %57 = arith.index_cast %arg1 : i32 to index
      %c0_27 = arith.constant 0 : index
      %c0_28 = arith.constant 0 : index
      %58 = vector.load %arg7[%57, %c0_27, %c0_28] : memref<1x16x1xf32, #tpu.memory_space<vmem>>, vector<1x16x1xf32>
      %59 = vector.shape_cast %58 : vector<1x16x1xf32> to vector<16x1xf32>
      %60 = arith.index_cast %arg1 : i32 to index
      %c0_29 = arith.constant 0 : index
      %c0_30 = arith.constant 0 : index
      %61 = vector.load %arg8[%60, %c0_29, %c0_30] : memref<1x16x1xf32, #tpu.memory_space<vmem>>, vector<1x16x1xf32>
      %62 = vector.shape_cast %61 : vector<1x16x1xf32> to vector<16x1xf32>
      %63 = math.log %62 : vector<16x1xf32>
      %64 = arith.addf %59, %63 : vector<16x1xf32>
      %65 = arith.index_cast %arg1 : i32 to index
      %c0_31 = arith.constant 0 : index
      %c0_32 = arith.constant 0 : index
      %66 = vector.load %arg9[%65, %c0_31, %c0_32] : memref<1x16x1xf32, #tpu.memory_space<vmem>>, vector<1x16x1xf32>
      %67 = vector.shape_cast %66 : vector<1x16x1xf32> to vector<16x1xf32>
      %68 = arith.subf %64, %67 : vector<16x1xf32>
      %c0_i32_33 = arith.constant 0 : i32
      %69 = vector.broadcast %c0_i32_33 : i32 to vector<16x1xi32>
      %70 = arith.cmpi ne, %9, %69 : vector<16x1xi32>
      %c-100_i32 = arith.constant -100 : i32
      %71 = vector.broadcast %c-100_i32 : i32 to vector<16x1xi32>
      %72 = arith.cmpi ne, %9, %71 : vector<16x1xi32>
      %73 = arith.andi %70, %72 : vector<16x1xi1>
      %cst_34 = arith.constant 0.000000e+00 : f32
      %74 = vector.broadcast %cst_34 : f32 to vector<16x1xf32>
      %75 = arith.select %73, %68, %74 : vector<16x1xi1>, vector<16x1xf32>
      %76 = vector.shape_cast %75 : vector<16x1xf32> to vector<1x16x1xf32>
      %cst_35 = arith.constant dense<0.000000e+00> : vector<1xf32>
      %77 = vector.multi_reduction <add>, %76, %cst_35 [1, 2] : vector<1x16x1xf32> to vector<1xf32>
      %78 = vector.shape_cast %77 : vector<1xf32> to vector<1x1x1xf32>
      %79 = vector.extract %78[0, 0, 0] : f32 from vector<1x1x1xf32>
      %80 = arith.extui %73 : vector<16x1xi1> to vector<16x1xi32>
      %81 = arith.sitofp %80 : vector<16x1xi32> to vector<16x1xf32>
      %82 = vector.shape_cast %81 : vector<16x1xf32> to vector<1x16x1xf32>
      %cst_36 = arith.constant dense<0.000000e+00> : vector<1xf32>
      %83 = vector.multi_reduction <add>, %82, %cst_36 [1, 2] : vector<1x16x1xf32> to vector<1xf32>
      %84 = vector.shape_cast %83 : vector<1xf32> to vector<1x1x1xf32>
      %85 = vector.extract %84[0, 0, 0] : f32 from vector<1x1x1xf32>
      %86 = tpu.iota {dimensions = array<i32: 1>} : vector<1x2x128xi32>
      %c0_i32_37 = arith.constant 0 : i32
      %87 = vector.broadcast %c0_i32_37 : i32 to vector<1x2x128xi32>
      %88 = arith.cmpi eq, %86, %87 : vector<1x2x128xi32>
      %89 = vector.broadcast %79 : f32 to vector<1x2x128xf32>
      %90 = vector.broadcast %85 : f32 to vector<1x2x128xf32>
      %91 = arith.select %88, %89, %90 : vector<1x2x128xi1>, vector<1x2x128xf32>
      %c0_38 = arith.constant 0 : index
      %c0_39 = arith.constant 0 : index
      %c0_40 = arith.constant 0 : index
      %92 = vector.load %arg6[%c0_38, %c0_39, %c0_40] : memref<1x2x128xf32, #tpu.memory_space<vmem>>, vector<1x2x128xf32>
      tpu.vector_store %arg6[%c0_38, %c0_39, %c0_40], %91 {strides = array<i32>} : memref<1x2x128xf32, #tpu.memory_space<vmem>>, vector<1x2x128xf32>,
    } else {
    }
    return
  }
  func.func @transform_0(%arg0: i32, %arg1: i32) -> (i32, i32) {
    %c0_i32 = arith.constant 0 : i32
    %c0_i32_0 = arith.constant 0 : i32
    return %arg1, %c0_i32 : i32, i32
  }
  func.func @transform_1(%arg0: i32, %arg1: i32) -> (i32, i32) {
    %c0_i32 = arith.constant 0 : i32
    %c0_i32_0 = arith.constant 0 : i32
    return %arg0, %c0_i32 : i32, i32
  }
  func.func @transform_2(%arg0: i32, %arg1: i32) -> (i32, i32) {
    %c0_i32 = arith.constant 0 : i32
    %c0_i32_0 = arith.constant 0 : i32
    return %arg1, %c0_i32 : i32, i32
  }
  func.func @transform_3(%arg0: i32, %arg1: i32) -> (i32, i32) {
    %c0_i32 = arith.constant 0 : i32
    return %arg1, %arg0 : i32, i32
  }
  func.func @transform_4(%arg0: i32, %arg1: i32) -> (i32, i32, i32) {
    %c0_i32 = arith.constant 0 : i32
    %c0_i32_0 = arith.constant 0 : i32
    %c0_i32_1 = arith.constant 0 : i32
    return %arg1, %c0_i32, %c0_i32_0 : i32, i32, i32
  }
}

</mosaic_0001>

<bundles_post_ra>
// kernel: t5_lm_head_and_loss.1
= control target key start
LH: loop header
LB: loop body
LE: loop exit
PB: predicated region body
PF: predicated region fallthrough
CT: control target
= control target key end

     0   :  { %vm68_vm0 = vcmask 261120   ;;  %s847_s0 = inlined_call_operand.vmem [shape: f32[16,32], index: 0, kind: input, shape index: {}]   ;;  %s848_s1 = inlined_call_operand.vmem [shape: f32[256,32], index: 1, kind: input, shape index: {}]   ;;  %s849_s2 = inlined_call_operand.vmem [shape: s32[16,1], index: 2, kind: input, shape index: {}]   ;;  %s850_s3 = inlined_call_operand.hbm [shape: f32[16,256], index: 3, kind: output, shape index: {0}]   ;;  %s851_s4 = inlined_call_operand.vmem [shape: f32[1,2,128], index: 4, kind: output, shape index: {1}]  }
   0x1   :  { %v67_v0 = vld [vmem:[%s848_s1 + $0xf8] sm:$0xff]  ;;  %v66_v2 = vld [vmem:[%s848_s1 + $0xf0] sm:$0xff]  ;;  %v65_v4 = vld [vmem:[%s848_s1 + $0xe8] sm:$0xff] }
   0x2   :  { %v51_v1 = vld [vmem:[%s848_s1 + $0x78] sm:$0xff]  ;;  %462 = vmatprep.subr.msk.mxu0 %vm68_vm0, %v67_v0  ;;  %498 = vmatprep.subr.msk.mxu1 %vm68_vm0, %v67_v0  ;;  %v50_v3 = vld [vmem:[%s848_s1 + $0x70] sm:$0xff]  ;;  %v49_v5 = vld [vmem:[%s848_s1 + $0x68] sm:$0xff] }
   0x3   :  { %463 = vmatpush3.xpose.msk.msra.mxu0 %vm68_vm0, %v51_v1  ;;  %514 = vmatpush3.xpose.msk.msra.mxu1 %vm68_vm0, %v51_v1  ;;  %v64_v6 = vld [vmem:[%s848_s1 + $0xe0] sm:$0xff]  ;;  %v33_v10 = vld [vmem:[%s847_s0 + $0x8] sm:$0xff] }
   0x4   :  { %464 = vmatprep.subr.msk.mxu0 %vm68_vm0, %v66_v2  ;;  %499 = vmatprep.subr.msk.mxu1 %vm68_vm0, %v66_v2  ;;  %v32_v7 = vld [vmem:[%s847_s0] sm:$0xff] }
   0x5   :  { %v48_v8 = vld [vmem:[%s848_s1 + $0x60] sm:$0xff]  ;;  %v652_v9 = vmul.f32 0.17677669, %v32_v7 }
   0x7   :  { %465 = vmatpush3.xpose.msk.msra.mxu0 %vm68_vm0, %v50_v3  ;;  %515 = vmatpush3.xpose.msk.msra.mxu1 %vm68_vm0, %v50_v3 }
   0x8   :  { %466 = vmatprep.subr.msk.mxu0 %vm68_vm0, %v65_v4  ;;  %500 = vmatprep.subr.msk.mxu1 %vm68_vm0, %v65_v4 }
   0xb   :  { %467 = vmatpush3.xpose.msk.msra.mxu0 %vm68_vm0, %v49_v5  ;;  %516 = vmatpush3.xpose.msk.msra.mxu1 %vm68_vm0, %v49_v5 }
   0xc   :  { %468 = vmatprep.subr.msk.mxu0 %vm68_vm0, %v64_v6  ;;  %501 = vmatprep.subr.msk.mxu1 %vm68_vm0, %v64_v6 }
   0xd   :  { %10 = vsyncpa [#allocation6], 0  ;;  %v63_v11 = vld [vmem:[%s848_s1 + $0xd8] sm:$0xff]  ;;  %v660_v12 = vmul.f32 0.17677669, %v33_v10  ;;  %494 = vmatprep.mubr.msk.f32.mxu0 %vm68_vm0, %v652_v9  ;;  %v62_v14 = vld [vmem:[%s848_s1 + $0xd0] sm:$0xff]  ;;  %v254_v49 = vlaneseq }
   0xe   :  { %v47_v13 = vld [vmem:[%s848_s1 + $0x58] sm:$0xff]  ;;  %v46_v15 = vld [vmem:[%s848_s1 + $0x50] sm:$0xff]  ;;  %v61_v16 = vld [vmem:[%s848_s1 + $0xc8] sm:$0xff]  ;;  %v580_v36 = vmov 0   ;;  %vm23_vm1 = vcmask 7168   ;;  %v581_v43 = vmov -inf  }
   0xf   :  { %469 = vmatpush3.xpose.msk.msra.mxu0 %vm68_vm0, %v48_v8  ;;  %517 = vmatpush3.xpose.msk.msra.mxu1 %vm68_vm0, %v48_v8  ;;  %v45_v17 = vld [vmem:[%s848_s1 + $0x48] sm:$0xff]  ;;  %v60_v18 = vld [vmem:[%s848_s1 + $0xc0] sm:$0xff]  ;;  %v59_v20 = vld [vmem:[%s848_s1 + $0xb8] sm:$0xff]  ;;  %24 = vst.msk [vmem:[#allocation2] sm:$0xff] %vm23_vm1, %v581_v43  ;;  %v582_v45 = vmov 0.0   ;;  %v255_v54 = vand.u32 127, %v254_v49 }
  0x10   :  { %470 = vmatprep.subr.msk.mxu0 %vm68_vm0, %v63_v11  ;;  %502 = vmatprep.subr.msk.mxu1 %vm68_vm0, %v63_v11  ;;  %v44_v19 = vld [vmem:[%s848_s1 + $0x40] sm:$0xff]  ;;  %v43_v21 = vld [vmem:[%s848_s1 + $0x38] sm:$0xff]  ;;  %v58_v22 = vld [vmem:[%s848_s1 + $0xb0] sm:$0xff]  ;;  %25 = vst.msk [vmem:[#allocation2 + $0x8] sm:$0xff] %vm23_vm1, %v581_v43 }
  0x11   :  { %496 = vmatprep.mubr.msk.f32.mxu1 %vm68_vm0, %v660_v12  ;;  %v42_v23 = vld [vmem:[%s848_s1 + $0x30] sm:$0xff]  ;;  %v57_v24 = vld [vmem:[%s848_s1 + $0xa8] sm:$0xff]  ;;  %v56_v26 = vld [vmem:[%s848_s1 + $0xa0] sm:$0xff]  ;;  %541 = vset.pattern.permute.xlu0 %v580_v36  ;;  %30 = vst.msk [vmem:[#allocation4] sm:$0xff] %vm23_vm1, %v582_v45  ;;  %v256_v57 = vadd.s32 128, %v255_v54 }
  0x12   :  { %v41_v25 = vld [vmem:[%s848_s1 + $0x28] sm:$0xff]  ;;  %v40_v27 = vld [vmem:[%s848_s1 + $0x20] sm:$0xff]  ;;  %v55_v28 = vld [vmem:[%s848_s1 + $0x98] sm:$0xff]  ;;  %540 = vset.pattern.permute.xlu1 %v580_v36  ;;  %27 = vst.msk [vmem:[#allocation3] sm:$0xff] %vm23_vm1, %v582_v45 }
  0x13   :  { %471 = vmatpush3.xpose.msk.msra.mxu0 %vm68_vm0, %v47_v13  ;;  %518 = vmatpush3.xpose.msk.msra.mxu1 %vm68_vm0, %v47_v13  ;;  %v39_v29 = vld [vmem:[%s848_s1 + $0x18] sm:$0xff]  ;;  %v54_v30 = vld [vmem:[%s848_s1 + $0x90] sm:$0xff]  ;;  %v53_v32 = vld [vmem:[%s848_s1 + $0x88] sm:$0xff]  ;;  %28 = vst.msk [vmem:[#allocation3 + $0x8] sm:$0xff] %vm23_vm1, %v582_v45 }
  0x14   :  { %472 = vmatprep.subr.msk.mxu0 %vm68_vm0, %v62_v14  ;;  %503 = vmatprep.subr.msk.mxu1 %vm68_vm0, %v62_v14  ;;  %v38_v31 = vld [vmem:[%s848_s1 + $0x10] sm:$0xff]  ;;  %v37_v33 = vld [vmem:[%s848_s1 + $0x8] sm:$0xff]  ;;  %v52_v34 = vld [vmem:[%s848_s1 + $0x80] sm:$0xff]  ;;  %31 = vst.msk [vmem:[#allocation4 + $0x8] sm:$0xff] %vm23_vm1, %v582_v45 }
  0x15   :  { %v36_v35 = vld [vmem:[%s848_s1] sm:$0xff]  ;;  %v819_v56 = vld [vmem:[%s849_s2 + $0x8] sm:$0xff] }
  0x16   :  { %v802_v44 = vld [vmem:[%s849_s2] sm:$0xff]  ;;  %vm364_vm8 = vcmp.ne.s32.totalorder %v819_v56, 0  ;;  %vm366_vm9 = vcmp.ne.s32.totalorder %v819_v56, 4294967196  ;;  %s583_s2 = smov [#allocation5]  }
  0x17   :  { %473 = vmatpush3.xpose.msk.msra.mxu0 %vm68_vm0, %v46_v15  ;;  %519 = vmatpush3.xpose.msk.msra.mxu1 %vm68_vm0, %v46_v15  ;;  %v259_v46 = vld [vmem:[#allocation2] sm:$0xff]  ;;  %v260_v50 = vld [vmem:[#allocation2 + $0x8] sm:$0xff]  ;;  %vm363_vm6 = vcmp.ne.s32.totalorder %v802_v44, 0  ;;  %vm365_vm7 = vcmp.ne.s32.totalorder %v802_v44, 4294967196  ;;  %vm368_vm11 = vmand %vm364_vm8, %vm366_vm9  ;;  %s411_s6 = sshll.u32 %s583_s2, 4  ;;  %s412_s6 = int_to_ptr.vmem [resolvable:$true] %s411_s6 }
  0x18   :  { %474 = vmatprep.subr.msk.mxu0 %vm68_vm0, %v61_v16  ;;  %504 = vmatprep.subr.msk.mxu1 %vm68_vm0, %v61_v16  ;;  %vm367_vm10 = vmand %vm363_vm6, %vm365_vm7  ;;  %s558_s7 = scalar_lea.vmem %s412_s6, 512  ;;  %p563_p1 = scmp.lt.s32.totalorder %s412_s6, %s412_s6 }
  0x19   :  { %p559_p0 = scmp.ne.s32.totalorder %s412_s6, %s558_s7  ;;  %p564_p2 = scmp.lt.s32.totalorder %s558_s7, %s558_s7 }
  0x1b   :  { %475 = vmatpush3.xpose.msk.msra.mxu0 %vm68_vm0, %v45_v17  ;;  %520 = vmatpush3.xpose.msk.msra.mxu1 %vm68_vm0, %v45_v17  ;;  %v314_v17 = vld [vmem:[#allocation4] sm:$0xff]  ;;  %p565_p3 = por %p564_p2, %p563_p1 }
  0x1c   :  { %476 = vmatprep.subr.msk.mxu0 %vm68_vm0, %v60_v18  ;;  %505 = vmatprep.subr.msk.mxu1 %vm68_vm0, %v60_v18 }
  0x1d   :  { %p566_p4 = pnand %p565_p3, %p559_p0 }
  0x1f   :  { %477 = vmatpush3.xpose.msk.msra.mxu0 %vm68_vm0, %v44_v19  ;;  %521 = vmatpush3.xpose.msk.msra.mxu1 %vm68_vm0, %v44_v19 }
  0x20   :  { %478 = vmatprep.subr.msk.mxu0 %vm68_vm0, %v59_v20  ;;  %506 = vmatprep.subr.msk.mxu1 %vm68_vm0, %v59_v20 }
  0x23   :  { %479 = vmatpush3.xpose.msk.msra.mxu0 %vm68_vm0, %v43_v21  ;;  %522 = vmatpush3.xpose.msk.msra.mxu1 %vm68_vm0, %v43_v21 }
  0x24   :  { %480 = vmatprep.subr.msk.mxu0 %vm68_vm0, %v58_v22  ;;  %507 = vmatprep.subr.msk.mxu1 %vm68_vm0, %v58_v22 }
  0x27   :  { %481 = vmatpush3.xpose.msk.msra.mxu0 %vm68_vm0, %v42_v23  ;;  %523 = vmatpush3.xpose.msk.msra.mxu1 %vm68_vm0, %v42_v23 }
  0x28   :  { %482 = vmatprep.subr.msk.mxu0 %vm68_vm0, %v57_v24  ;;  %508 = vmatprep.subr.msk.mxu1 %vm68_vm0, %v57_v24  ;;  %v276_v24 = vld [vmem:[#allocation3] sm:$0xff] }
  0x2b   :  { %483 = vmatpush3.xpose.msk.msra.mxu0 %vm68_vm0, %v41_v25  ;;  %524 = vmatpush3.xpose.msk.msra.mxu1 %vm68_vm0, %v41_v25 }
  0x2c   :  { %484 = vmatprep.subr.msk.mxu0 %vm68_vm0, %v56_v26  ;;  %509 = vmatprep.subr.msk.mxu1 %vm68_vm0, %v56_v26 }
  0x2f   :  { %485 = vmatpush3.xpose.msk.msra.mxu0 %vm68_vm0, %v40_v27  ;;  %525 = vmatpush3.xpose.msk.msra.mxu1 %vm68_vm0, %v40_v27 }
  0x30   :  { %486 = vmatprep.subr.msk.mxu0 %vm68_vm0, %v55_v28  ;;  %510 = vmatprep.subr.msk.mxu1 %vm68_vm0, %v55_v28  ;;  %v277_v28 = vld [vmem:[#allocation3 + $0x8] sm:$0xff] }
  0x33   :  { %487 = vmatpush3.xpose.msk.msra.mxu0 %vm68_vm0, %v39_v29  ;;  %526 = vmatpush3.xpose.msk.msra.mxu1 %vm68_vm0, %v39_v29 }
  0x34   :  { %488 = vmatprep.subr.msk.mxu0 %vm68_vm0, %v54_v30  ;;  %511 = vmatprep.subr.msk.mxu1 %vm68_vm0, %v54_v30 }
  0x37   :  { %489 = vmatpush3.xpose.msk.msra.mxu0 %vm68_vm0, %v38_v31  ;;  %527 = vmatpush3.xpose.msk.msra.mxu1 %vm68_vm0, %v38_v31 }
  0x38   :  { %490 = vmatprep.subr.msk.mxu0 %vm68_vm0, %v53_v32  ;;  %512 = vmatprep.subr.msk.mxu1 %vm68_vm0, %v53_v32 }
  0x3b   :  { %491 = vmatpush3.xpose.msk.msra.mxu0 %vm68_vm0, %v37_v33  ;;  %528 = vmatpush3.xpose.msk.msra.mxu1 %vm68_vm0, %v37_v33  ;;  %v315_v33 = vld [vmem:[#allocation4 + $0x8] sm:$0xff] }
  0x3c   :  { %492 = vmatprep.subr.msk.mxu0 %vm68_vm0, %v52_v34  ;;  %513 = vmatprep.subr.msk.mxu1 %vm68_vm0, %v52_v34 }
  0x3f   :  { %493 = vmatpush3.xpose.msk.msra.mxu0 %vm68_vm0, %v36_v35  ;;  %529 = vmatpush3.xpose.msk.msra.mxu1 %vm68_vm0, %v36_v35 }
  0x42   :  { %495 = vmatmul.mubr.msk.f32.vlgmr.msra.gmra.mxu0 %vm68_vm0, %v652_v9  ;;  %497 = vmatmul.mubr.msk.f32.vlgmr.msra.gmra.mxu1 %vm68_vm0, %v660_v12 }
 0x102   :  { %v237_v37 = vpop.f32.mrf.mxu0  ;;  %v789_v38 = vpop.f32.mrf.mxu1 }
 0x103   :  { %248 = vst [vmem:[#allocation5] sm:$0xff] %v237_v37  ;;  %250 = vst [vmem:[#allocation5 + $0x10] sm:$0xff] %v789_v38 }
 0x104   :  { %v239_v39 = vpop.f32.mrf.mxu0  ;;  %v792_v40 = vpop.f32.mrf.mxu1 }
 0x105   :  { %249 = vst [vmem:[#allocation5 + $0x8] sm:$0xff] %v239_v39  ;;  %251 = vst [vmem:[#allocation5 + $0x18] sm:$0xff] %v792_v40  ;;  %v261_v41 = vmax.f32 %v237_v37, %v239_v39  ;;  %v264_v42 = vmax.f32 %v789_v38, %v792_v40 }
 0x107   :  { %262 = vmax.xlane.f32.xlu0 %v261_v41 }
 0x10b   :  { %265 = vmax.xlane.f32.xlu0 %v264_v42 }
 0x121   :  { %321 = vperm.xlu0 %541, %v802_v44   ;;  %v461_v44 = vsel %vm368_vm11, 1.0, %v582_v45 }
 0x190   :  { %v263_v47 = vpop.xlane.xlu0 %262 }
 0x191   :  { %v267_v48 = vmax.f32 %v259_v46, %v263_v47 }
 0x193   :  { %v269_v51 = vsub.f32 %v259_v46, %v267_v48  ;;  %344 = vst.msk [vmem:[#allocation2] sm:$0xff] %vm23_vm1, %v267_v48  ;;  %282 = vperm.xlu1 %540, %v267_v48  }
 0x194   :  { %v266_v52 = vpop.xlane.xlu0 %265 }
 0x195   :  { %v268_v53 = vmax.f32 %v260_v50, %v266_v52  ;;  %v271_v21 = vmul.f32 1.442695, %v269_v51 }
 0x197   :  { %v270_v55 = vsub.f32 %v260_v50, %v268_v53  ;;  %345 = vst.msk [vmem:[#allocation2 + $0x8] sm:$0xff] %vm23_vm1, %v268_v53  ;;  %287 = vperm.xlu1 %540, %v268_v53  }
 0x199   :  { %v273_v22 = vmul.f32 1.442695, %v270_v55 }
 0x19b   :  { %324 = vperm.xlu1 %540, %v819_v56  }
 0x19c   :  { %v322_v58 = vpop.permute.xlu0 %321 }
 0x19d   :  { %vm326_vm2 = vcmp.eq.s32.totalorder %v255_v54, %v322_v58  ;;  %vm327_vm3 = vcmp.eq.s32.totalorder %v256_v57, %v322_v58 }
 0x19e   :  { %v330_v59 = vsel %vm326_vm2, %v237_v37, 0.0  ;;  %v331_v60 = vsel %vm327_vm3, %v239_v39, 0.0  ;;  %v350_v48 = vld [vmem:[#allocation2 + $0x8] sm:$0xff] }
 0x19f   :  { %v334_v61 = vadd.f32 %v331_v60, %v330_v59  ;;  %v388_v59 = vsel %vm23_vm1, %v461_v44, 0.0 }
 0x1a1   :  { %335 = vadd.xlane.f32.xlu0 %v334_v61 }
 0x20e   :  { %v283_v62 = vpop.permute.xlu1 %282 }
 0x20f   :  { %v290_v63 = vsub.f32 %v237_v37, %v283_v62  ;;  %v291_v0 = vsub.f32 %v239_v39, %v283_v62 }
 0x211   :  { %v294_v1 = vmul.f32 1.442695, %v290_v63  ;;  %v296_v2 = vmul.f32 1.442695, %v291_v0 }
 0x212   :  { %v288_v3 = vpop.permute.xlu1 %287 }
 0x213   :  { %542 = vpow2.f32 %v294_v1  ;;  %v292_v4 = vsub.f32 %v789_v38, %v288_v3  ;;  %v293_v5 = vsub.f32 %v792_v40, %v288_v3 }
 0x214   :  { %544 = vpow2.f32 %v296_v2 }
 0x215   :  { %v298_v6 = vmul.f32 1.442695, %v292_v4  ;;  %v300_v7 = vmul.f32 1.442695, %v293_v5 }
 0x216   :  { %v325_v10 = vpop.permute.xlu1 %324 }
 0x217   :  { %546 = vpow2.f32 %v298_v6  ;;  %vm328_vm4 = vcmp.eq.s32.totalorder %v255_v54, %v325_v10  ;;  %vm329_vm5 = vcmp.eq.s32.totalorder %v256_v57, %v325_v10  ;;  %v460_v54 = vsel %vm367_vm10, 1.0, %v582_v45 }
 0x218   :  { %548 = vpow2.f32 %v300_v7  ;;  %v332_v15 = vsel %vm328_vm4, %v789_v38, 0.0  ;;  %v333_v16 = vsel %vm329_vm5, %v792_v40, 0.0  ;;  %v349_v40 = vld [vmem:[#allocation2] sm:$0xff]  ;;  %v387_v56 = vsel %vm23_vm1, %v460_v54, 0.0 }
 0x219   :  { %v337_v19 = vadd.f32 %v333_v16, %v332_v15  ;;  %550 = vpow2.f32 %v271_v21  ;;  %v389_v61 = vadd.f32 %v388_v59, %v387_v56 }
 0x21a   :  { %552 = vpow2.f32 %v273_v22 }
 0x220   :  { %v543_v8 = vpop.eup %542 }
 0x221   :  { %v545_v9 = vpop.eup %544 }
 0x222   :  { %v302_v11 = vadd.f32 %v545_v9, %v543_v8 }
 0x224   :  { %v547_v12 = vpop.eup %546  ;;  %303 = vadd.xlane.f32.xlu1 %v302_v11 }
 0x225   :  { %v549_v13 = vpop.eup %548 }
 0x226   :  { %v305_v14 = vadd.f32 %v549_v13, %v547_v12  ;;  %v551_v23 = vpop.eup %550 }
 0x227   :  { %v278_v25 = vmul.f32 %v551_v23, %v276_v24  ;;  %v553_v26 = vpop.eup %552 }
 0x228   :  { %306 = vadd.xlane.f32.xlu1 %v305_v14  ;;  %v279_v30 = vmul.f32 %v553_v26, %v277_v28 }
 0x22a   :  { %v336_v18 = vpop.xlane.xlu0 %335 }
 0x22b   :  { %v340_v20 = vadd.f32 %v336_v18, %v314_v17 }
 0x22c   :  { %338 = vadd.xlane.f32.xlu1 %v337_v19 }
 0x22d   :  { %342 = vst.msk [vmem:[#allocation4] sm:$0xff] %vm23_vm1, %v340_v20 }
 0x234   :  { %v359_v43 = vld [vmem:[#allocation4] sm:$0xff] }
 0x2ad   :  { %v304_v27 = vpop.xlane.xlu1 %303 }
 0x2ae   :  { %v308_v29 = vadd.f32 %v304_v27, %v278_v25 }
 0x2b0   :  { %311 = vst.msk [vmem:[#allocation3] sm:$0xff] %vm23_vm1, %v308_v29 }
 0x2b1   :  { %v307_v31 = vpop.xlane.xlu1 %306 }
 0x2b2   :  { %v309_v32 = vadd.f32 %v307_v31, %v279_v30 }
 0x2b4   :  { %312 = vst.msk [vmem:[#allocation3 + $0x8] sm:$0xff] %vm23_vm1, %v309_v32 }
 0x2b5   :  { %v339_v34 = vpop.xlane.xlu1 %338 }
 0x2b6   :  { %v341_v35 = vadd.f32 %v339_v34, %v315_v33 }
 0x2b7   :  { %v351_v36 = vld [vmem:[#allocation3] sm:$0xff] }
 0x2b8   :  { %343 = vst.msk [vmem:[#allocation4 + $0x8] sm:$0xff] %vm23_vm1, %v341_v35  ;;  %554 = vlog2.f32 %v351_v36 }
 0x2bb   :  { %v352_v37 = vld [vmem:[#allocation3 + $0x8] sm:$0xff] }
 0x2bc   :  { %556 = vlog2.f32 %v352_v37 }
 0x2bf   :  { %v360_v51 = vld [vmem:[#allocation4 + $0x8] sm:$0xff] }
 0x2c5   :  { %v555_v38 = vpop.eup %554 }
 0x2c6   :  { %v354_v39 = vmul.f32 0.6931472, %v555_v38 }
 0x2c8   :  { %v357_v41 = vadd.f32 %v354_v39, %v349_v40 }
 0x2c9   :  { %v557_v42 = vpop.eup %556 }
 0x2ca   :  { %v356_v46 = vmul.f32 0.6931472, %v557_v42  ;;  %v361_v47 = vsub.f32 %v357_v41, %v359_v43 }
 0x2cc   :  { %v358_v50 = vadd.f32 %v356_v46, %v350_v48  ;;  %v369_v53 = vsel %vm367_vm10, %v361_v47, 0.0 }
 0x2cd   :  { %v371_v57 = vsel %vm23_vm1, %v369_v53, 0.0 }
 0x2ce   :  { %v362_v52 = vsub.f32 %v358_v50, %v360_v51 }
 0x2d0   :  { %v370_v55 = vsel %vm368_vm11, %v362_v52, 0.0 }
 0x2d1   :  { %v372_v58 = vsel %vm23_vm1, %v370_v55, 0.0 }
 0x2d2   :  { %v373_v60 = vadd.f32 %v372_v58, %v371_v57 }
 0x2d4   :  { %374 = vadd.xlane.f32.xlu1 %v373_v60 }
 0x2d8   :  { %390 = vadd.xlane.f32.xlu1 %v389_v61 }
 0x2d9   :  { %569 = shalt.err (!%p566_p4)
}
 0x2da   :  { %s584_s8 = smov 256   ;;  %s585_s9 = smov 16   ;;  %v400_v11 = vshrl.u32 %v254_v49, 7 }
 0x2db   :  { %417 = dma.vmem_to_hbm [thread:$0]  %s412_s6, 512, %s850_s3, [#allocation6], %s584_s8, %s584_s8, %s585_s9  }
 0x2dc   :  { %vm401_vm12 = vcmp.eq.s32.totalorder %v400_v11, 0 }
 0x35d   :  { %v375_v45 = vpop.xlane.xlu1 %374 }
 0x35e   :  { %v376_v62 = vrot.slane %v375_v45, 4 }
 0x360   :  { %v377_v63 = vadd.f32 %v376_v62, %v375_v45 }
 0x361   :  { %v391_v0 = vpop.xlane.xlu1 %390 }
 0x362   :  { %v378_v1 = vrot.slane %v377_v63, 2  ;;  %v392_v2 = vrot.slane %v391_v0, 4 }
 0x364   :  { %v393_v3 = vadd.f32 %v392_v2, %v391_v0  ;;  %v379_v4 = vadd.f32 %v378_v1, %v377_v63 }
 0x366   :  { %v394_v5 = vrot.slane %v393_v3, 2  ;;  %v380_v6 = vrot.slane %v379_v4, 1 }
 0x368   :  { %v395_v7 = vadd.f32 %v394_v5, %v393_v3  ;;  %v381_v8 = vadd.f32 %v380_v6, %v379_v4 }
 0x36a   :  { %530 = vpush %v381_v8  ;;  %v396_v9 = vrot.slane %v395_v7, 1 }
 0x36c   :  { %v397_v10 = vadd.f32 %v396_v9, %v395_v7 }
 0x36e   :  { %532 = vpush %v397_v10 }
 0x39b   :  { %s531_s12 = spop %530 }
 0x39c   :  { %v402_v12 = vstv %s531_s12 }
 0x39f   :  { %s533_s3 = spop %532 }
 0x3a0   :  { %v403_v13 = vstv %s533_s3 }
 0x3a1   :  { %v404_v14 = vsel %vm401_vm12, %v402_v12, %v403_v13 }
 0x3a2   :  { %405 = vst [vmem:[%s851_s4] sm:$0x3] %v404_v14 }
 0x3a3   :  { %578 = dma.done.wait [#allocation6], 512  }
 0x3a4   :  { %579 = vsyncadd [#allocation6], 4294966784 }
 0x3a5   :  { %425 = vsyncpa [#allocation6], 1 }

</bundles_post_ra>
